<compile_context>
chip_gen: v5e
topology: v5e:2x2
jax: 0.10.0
libtpu: 0.0.40
codegen_flags: <defaults>
</compile_context>

<pallas_src>
import jax
import jax.numpy as jnp
from jax.experimental import pallas as pl
from jax.experimental.pallas import tpu as pltpu


def _round_up(x, m):
    return ((x + m - 1) // m) * m


def _cdiv(a, b):
    return -(-a // b)


def _disc_mlp_kernel(x_ref, w0_ref, b0_ref, w1_ref, b1_ref, w2_ref, b2_ref,
                     out_ref):
    """One row-tile of the fused MLP: Linear -> LReLU -> Linear -> LReLU -> Linear(->1)."""
    # Cast x to bf16 in-kernel (VPU); avoids a wrapper-side bf16 copy in HBM.
    x = x_ref[...].astype(jnp.bfloat16)                             # (TM, pacdim)

    # Layer 0: bf16 MXU matmul, f32 accumulation; bias + LeakyReLU(0.2) in f32.
    h = jnp.dot(x, w0_ref[...], preferred_element_type=jnp.float32) + b0_ref[...]
    h = jnp.maximum(h, 0.2 * h)

    # Layer 1: cast activation to bf16 only for the MXU input.
    h = jnp.dot(h.astype(jnp.bfloat16), w1_ref[...],
                preferred_element_type=jnp.float32) + b1_ref[...]
    h = jnp.maximum(h, 0.2 * h)

    # Final Linear(d1, 1): VPU multiply + lane (XLU) reduction, not an N=1 matmul.
    o = jnp.sum(h * w2_ref[...], axis=-1, keepdims=True) + b2_ref[0]  # (TM, 1) f32

    out_ref[...] = o.astype(out_ref.dtype)                            # (TM, 1)


def prepare_params(params):
    """Pad hidden widths to multiples of 128 and cast matmul weights to bf16.

    Call once and reuse across forward calls (hoisted off the per-call path).
    Zero-padding is exact: padded weight rows/cols are 0 and LeakyReLU(0) = 0.
    Weights are stored transposed as (in_features, out_features).
    """
    (w0, b0), (w1, b1), (w2, b2) = params
    pacdim, d0 = w0.shape
    d1 = w1.shape[1]
    d0p, d1p = _round_up(d0, 128), _round_up(d1, 128)

    w0p = jnp.zeros((pacdim, d0p), jnp.bfloat16).at[:, :d0].set(w0.astype(jnp.bfloat16))
    b0p = jnp.zeros((1, d0p), jnp.float32).at[:, :d0].set(b0.reshape(1, d0))
    w1p = jnp.zeros((d0p, d1p), jnp.bfloat16).at[:d0, :d1].set(w1.astype(jnp.bfloat16))
    b1p = jnp.zeros((1, d1p), jnp.float32).at[:, :d1].set(b1.reshape(1, d1))
    w2p = jnp.zeros((1, d1p), jnp.float32).at[:, :d1].set(w2.reshape(1, d1))
    b2s = b2.reshape(1).astype(jnp.float32)
    return (w0p, b0p, w1p, b1p, w2p, b2s)


def discriminator_forward(x, prepared, pac, *, tile_rows=512,
                          vmem_budget_bytes=28 << 20):
    """x: (batch, input_dim) with batch % pac == 0.  Returns (batch // pac, 1) f32."""
    w0p, b0p, w1p, b1p, w2p, b2s = prepared
    batch, input_dim = x.shape
    assert batch % pac == 0
    pacdim = input_dim * pac
    assert w0p.shape[0] == pacdim, "prepared params do not match input_dim * pac"
    rows = batch // pac
    d0p, d1p = w0p.shape[1], w1p.shape[1]

    # PyTorch:  input.view(-1, self.pacdim)  (contiguous reshape, no copy).
    x_packed = x.reshape(rows, pacdim)

    # Tile the rows axis: balance tiles (minimal padding), and shrink TM if the
    # VMEM estimate (2 x-buffers + single-buffered weights + 2 tiny out buffers)
    # exceeds the per-generation budget.
    w_bytes = ((w0p.size + w1p.size) * w0p.dtype.itemsize
               + (b0p.size + b1p.size + w2p.size) * 4)

    def vmem_est(tm):
        return 2 * tm * pacdim * x.dtype.itemsize + 2 * tm * 4 + w_bytes

    grid_steps = max(1, _cdiv(rows, tile_rows))
    TM = _round_up(_cdiv(rows, grid_steps), 8)
    while TM > 8 and vmem_est(TM) > vmem_budget_bytes:
        grid_steps *= 2
        TM = _round_up(_cdiv(rows, grid_steps), 8)
    grid_steps = _cdiv(rows, TM)
    rows_pad = grid_steps * TM

    # Only materialize a padded copy of x when row padding is actually needed.
    if rows_pad != rows:
        x_in = jnp.zeros((rows_pad, pacdim), x.dtype).at[:rows].set(x_packed)
    else:
        x_in = x_packed

    flops = 2 * rows_pad * (pacdim * d0p + d0p * d1p + d1p)
    bytes_accessed = (rows_pad * pacdim * x.dtype.itemsize + w_bytes
                      + rows_pad * 4 + 4)
    vmem_limit = int(min(64 << 20, max(32 << 20, int(1.5 * vmem_est(TM)) + (2 << 20))))

    resident = dict(pipeline_mode=pl.Buffered(1))   # constant-index blocks: single-buffer

    out = pl.pallas_call(
        _disc_mlp_kernel,
        out_shape=jax.ShapeDtypeStruct((rows_pad, 1), jnp.float32),
        grid=(grid_steps,),
        in_specs=[
            pl.BlockSpec((TM, pacdim), lambda i: (i, 0)),                 # x tile (double-buffered)
            pl.BlockSpec((pacdim, d0p), lambda i: (0, 0), **resident),    # w0 (resident)
            pl.BlockSpec((1, d0p), lambda i: (0, 0), **resident),         # b0
            pl.BlockSpec((d0p, d1p), lambda i: (0, 0), **resident),       # w1 (resident)
            pl.BlockSpec((1, d1p), lambda i: (0, 0), **resident),         # b1
            pl.BlockSpec((1, d1p), lambda i: (0, 0), **resident),         # w2 row vector
            pl.BlockSpec(memory_space=pltpu.MemorySpace.SMEM),            # b2 scalar
        ],
        out_specs=pl.BlockSpec((TM, 1), lambda i: (i, 0)),
        compiler_params=pltpu.CompilerParams(
            dimension_semantics=("parallel",),
            vmem_limit_bytes=vmem_limit),
        cost_estimate=pl.CostEstimate(
            flops=flops, transcendentals=0, bytes_accessed=bytes_accessed),
    )(x_in, w0p, b0p, w1p, b1p, w2p, b2s)

    return out[:rows]


def init_params(key, input_dim, discriminator_dim, pac):
    """torch.nn.Linear-style init (uniform +-1/sqrt(fan_in)); weights stored
    transposed as (in_features, out_features), biases as (1, out_features)."""
    dims = [input_dim * pac] + list(discriminator_dim) + [1]
    params = []
    for i in range(len(dims) - 1):
        fan_in, fan_out = dims[i], dims[i + 1]
        key, kw, kb = jax.random.split(key, 3)
        bound = 1.0 / jnp.sqrt(fan_in)
        w = jax.random.uniform(kw, (fan_in, fan_out), jnp.float32, -bound, bound)
        b = jax.random.uniform(kb, (1, fan_out), jnp.float32, -bound, bound)
        params.append((w, b))
    return params


def discriminator_ref(x, params, pac):
    """Plain-JAX f32 reference of the same forward (eval mode)."""
    rows = x.shape[0] // pac
    h = x.reshape(rows, -1)
    (w0, b0), (w1, b1), (w2, b2) = params
    h = h @ w0 + b0
    h = jnp.where(h >= 0, h, 0.2 * h)
    h = h @ w1 + b1
    h = jnp.where(h >= 0, h, 0.2 * h)
    return h @ w2 + b2


if __name__ == "__main__":
    # Small, forward-consistent shapes.
    input_dim = 16
    pac = 10
    discriminator_dim = (32, 32)

    key = jax.random.PRNGKey(0)
    params = init_params(key, input_dim, discriminator_dim, pac)
    prepared = prepare_params(params)          # hoisted: pad/cast weights once

    # Case 1: rows is a multiple of the sublane group (no row padding needed).
    key, kx1 = jax.random.split(key)
    x1 = jax.random.normal(kx1, (80, input_dim), dtype=jnp.float32)   # rows = 8
    out1 = jax.block_until_ready(discriminator_forward(x1, prepared, pac))
    ref1 = discriminator_ref(x1, params, pac)
    assert out1.shape == (80 // pac, 1)
    assert jnp.allclose(out1, ref1, atol=5e-2, rtol=5e-2), (out1, ref1)

    # Case 2: ragged row count (exercises the explicit row-padding path).
    key, kx2 = jax.random.split(key)
    x2 = jax.random.normal(kx2, (50, input_dim), dtype=jnp.float32)   # rows = 5
    out2 = jax.block_until_ready(discriminator_forward(x2, prepared, pac))
    ref2 = discriminator_ref(x2, params, pac)
    assert out2.shape == (50 // pac, 1)
    assert jnp.allclose(out2, ref2, atol=5e-2, rtol=5e-2), (out2, ref2)

    print("KERNEL_OK")
</pallas_src>

<mosaic_0001>
module attributes {stable_mosaic.version = 11 : i64} {
  func.func @_disc_mlp_kernel(%arg0: i32, %arg1: memref<8x160xf32, #tpu.memory_space<vmem>>, %arg2: memref<160x128xbf16, #tpu.memory_space<vmem>>, %arg3: memref<1x128xf32, #tpu.memory_space<vmem>>, %arg4: memref<128x128xbf16, #tpu.memory_space<vmem>>, %arg5: memref<1x128xf32, #tpu.memory_space<vmem>>, %arg6: memref<1x128xf32, #tpu.memory_space<vmem>>, %arg7: memref<1xf32, #tpu.memory_space<smem>>, %arg8: memref<8x1xf32, #tpu.memory_space<vmem>>) attributes {dimension_semantics = [#tpu.dimension_semantics<parallel>], iteration_bounds = array<i64: 1>, scalar_prefetch = 0 : i64, scratch_operands = 0 : i64, tpu.core_type = #tpu.core_type<tc>, window_params = [{transform_indices = @transform_0, window_bounds = array<i64: 8, 160>}, {pipeline_mode = #tpu.pipeline_mode<synchronous>, transform_indices = @transform_1, window_bounds = array<i64: 160, 128>}, {pipeline_mode = #tpu.pipeline_mode<synchronous>, transform_indices = @transform_2, window_bounds = array<i64: 1, 128>}, {pipeline_mode = #tpu.pipeline_mode<synchronous>, transform_indices = @transform_3, window_bounds = array<i64: 128, 128>}, {pipeline_mode = #tpu.pipeline_mode<synchronous>, transform_indices = @transform_4, window_bounds = array<i64: 1, 128>}, {pipeline_mode = #tpu.pipeline_mode<synchronous>, transform_indices = @transform_5, window_bounds = array<i64: 1, 128>}, {transform_indices = @transform_6, window_bounds = array<i64: 1>}, {transform_indices = @transform_7, window_bounds = array<i64: 8, 1>}]} {
    %c0 = arith.constant 0 : index
    %c0_0 = arith.constant 0 : index
    %0 = vector.load %arg1[%c0, %c0_0] : memref<8x160xf32, #tpu.memory_space<vmem>>, vector<8x160xf32>
    %1 = arith.truncf %0 : vector<8x160xf32> to vector<8x160xbf16>
    %c0_1 = arith.constant 0 : index
    %c0_2 = arith.constant 0 : index
    %2 = vector.load %arg2[%c0_1, %c0_2] : memref<160x128xbf16, #tpu.memory_space<vmem>>, vector<160x128xbf16>
    %cst = arith.constant dense<0.000000e+00> : vector<8x128xf32>
    %3 = tpu.matmul %1, %2, %cst {dimension_numbers = #tpu.dot_dimension_numbers<[1], [0], [0], [1], [0, 0, 1, 1], [], []>} : vector<8x160xbf16>, vector<160x128xbf16>, vector<8x128xf32> -> vector<8x128xf32>
    %c0_3 = arith.constant 0 : index
    %c0_4 = arith.constant 0 : index
    %4 = vector.load %arg3[%c0_3, %c0_4] : memref<1x128xf32, #tpu.memory_space<vmem>>, vector<1x128xf32>
    %5 = vector.broadcast %4 : vector<1x128xf32> to vector<8x128xf32>
    %6 = arith.addf %3, %5 : vector<8x128xf32>
    %cst_5 = arith.constant 2.000000e-01 : f32
    %7 = vector.broadcast %cst_5 : f32 to vector<8x128xf32>
    %8 = arith.mulf %7, %6 : vector<8x128xf32>
    %9 = arith.maximumf %6, %8 : vector<8x128xf32>
    %10 = arith.truncf %9 : vector<8x128xf32> to vector<8x128xbf16>
    %c0_6 = arith.constant 0 : index
    %c0_7 = arith.constant 0 : index
    %11 = vector.load %arg4[%c0_6, %c0_7] : memref<128x128xbf16, #tpu.memory_space<vmem>>, vector<128x128xbf16>
    %cst_8 = arith.constant dense<0.000000e+00> : vector<8x128xf32>
    %12 = tpu.matmul %10, %11, %cst_8 {dimension_numbers = #tpu.dot_dimension_numbers<[1], [0], [0], [1], [0, 0, 1, 1], [], []>} : vector<8x128xbf16>, vector<128x128xbf16>, vector<8x128xf32> -> vector<8x128xf32>
    %c0_9 = arith.constant 0 : index
    %c0_10 = arith.constant 0 : index
    %13 = vector.load %arg5[%c0_9, %c0_10] : memref<1x128xf32, #tpu.memory_space<vmem>>, vector<1x128xf32>
    %14 = vector.broadcast %13 : vector<1x128xf32> to vector<8x128xf32>
    %15 = arith.addf %12, %14 : vector<8x128xf32>
    %cst_11 = arith.constant 2.000000e-01 : f32
    %16 = vector.broadcast %cst_11 : f32 to vector<8x128xf32>
    %17 = arith.mulf %16, %15 : vector<8x128xf32>
    %18 = arith.maximumf %15, %17 : vector<8x128xf32>
    %c0_12 = arith.constant 0 : index
    %c0_13 = arith.constant 0 : index
    %19 = vector.load %arg6[%c0_12, %c0_13] : memref<1x128xf32, #tpu.memory_space<vmem>>, vector<1x128xf32>
    %20 = vector.broadcast %19 : vector<1x128xf32> to vector<8x128xf32>
    %21 = arith.mulf %18, %20 : vector<8x128xf32>
    %cst_14 = arith.constant dense<0.000000e+00> : vector<8xf32>
    %22 = vector.multi_reduction <add>, %21, %cst_14 [1] : vector<8x128xf32> to vector<8xf32>
    %23 = vector.shape_cast %22 : vector<8xf32> to vector<8x1xf32>
    %c0_15 = arith.constant 0 : index
    %24 = memref.load %arg7[%c0_15] : memref<1xf32, #tpu.memory_space<smem>>
    %25 = vector.broadcast %24 : f32 to vector<8x1xf32>
    %26 = arith.addf %23, %25 : vector<8x1xf32>
    %c0_16 = arith.constant 0 : index
    %c0_17 = arith.constant 0 : index
    %27 = vector.load %arg8[%c0_16, %c0_17] : memref<8x1xf32, #tpu.memory_space<vmem>>, vector<8x1xf32>
    tpu.vector_store %arg8[%c0_16, %c0_17], %26 {strides = array<i32>} : memref<8x1xf32, #tpu.memory_space<vmem>>, vector<8x1xf32>,
    return
  }
  func.func @transform_0(%arg0: i32) -> (i32, i32) {
    %c0_i32 = arith.constant 0 : i32
    %c0_i32_0 = arith.constant 0 : i32
    return %arg0, %c0_i32 : i32, i32
  }
  func.func @transform_1(%arg0: i32) -> (i32, i32) {
    %c0_i32 = arith.constant 0 : i32
    %c0_i32_0 = arith.constant 0 : i32
    %c0_i32_1 = arith.constant 0 : i32
    return %c0_i32, %c0_i32_0 : i32, i32
  }
  func.func @transform_2(%arg0: i32) -> (i32, i32) {
    %c0_i32 = arith.constant 0 : i32
    %c0_i32_0 = arith.constant 0 : i32
    %c0_i32_1 = arith.constant 0 : i32
    return %c0_i32, %c0_i32_0 : i32, i32
  }
  func.func @transform_3(%arg0: i32) -> (i32, i32) {
    %c0_i32 = arith.constant 0 : i32
    %c0_i32_0 = arith.constant 0 : i32
    %c0_i32_1 = arith.constant 0 : i32
    return %c0_i32, %c0_i32_0 : i32, i32
  }
  func.func @transform_4(%arg0: i32) -> (i32, i32) {
    %c0_i32 = arith.constant 0 : i32
    %c0_i32_0 = arith.constant 0 : i32
    %c0_i32_1 = arith.constant 0 : i32
    return %c0_i32, %c0_i32_0 : i32, i32
  }
  func.func @transform_5(%arg0: i32) -> (i32, i32) {
    %c0_i32 = arith.constant 0 : i32
    %c0_i32_0 = arith.constant 0 : i32
    %c0_i32_1 = arith.constant 0 : i32
    return %c0_i32, %c0_i32_0 : i32, i32
  }
  func.func @transform_6(%arg0: i32) -> i32 {
    %c0_i32 = arith.constant 0 : i32
    %c0_i32_0 = arith.constant 0 : i32
    return %c0_i32 : i32
  }
  func.func @transform_7(%arg0: i32) -> (i32, i32) {
    %c0_i32 = arith.constant 0 : i32
    %c0_i32_0 = arith.constant 0 : i32
    return %arg0, %c0_i32 : i32, i32
  }
}

</mosaic_0001>

<bundles_post_ra>
// kernel: tpu_custom_call.1
= control target key start
LH: loop header
LB: loop body
LE: loop exit
PB: predicated region body
PF: predicated region fallthrough
CT: control target
= control target key end

     0   :  { %13 = vsyncpa [#allocation4], 0  ;;  %s539_s0 = inlined_call_operand.hbm [shape: f32[8,160], index: 0, kind: input, shape index: {}]   ;;  %s540_s1 = inlined_call_operand.hbm [shape: bf16[160,128], index: 1, kind: input, shape index: {}]   ;;  %s541_s2 = inlined_call_operand.vmem [shape: f32[1,128], index: 2, kind: input, shape index: {}]   ;;  %s542_s3 = inlined_call_operand.hbm [shape: bf16[128,128], index: 3, kind: input, shape index: {}]   ;;  %s543_s4 = inlined_call_operand.vmem [shape: f32[1,128], index: 4, kind: input, shape index: {}]   ;;  %s544_s5 = inlined_call_operand.vmem [shape: f32[1,128], index: 5, kind: input, shape index: {}]   ;;  %s545_s6 = inlined_call_operand.<no memory space> [shape: f32[1], index: 6, kind: input, shape index: {}]   ;;  %s546_s7 = inlined_call_operand.vmem [shape: f32[8,1], index: 7, kind: output, shape index: {}]  }
   0x1   :  { %14 = vsyncpa [#allocation6], 0  ;;  %s30_s26 = sshll.u32 %s540_s1, 4  ;;  %s470_s27 = smov [#allocation5]   ;;  %s31_s26 = int_to_ptr.hbm [resolvable:$true] %s30_s26 }
   0x2   :  { %s32_s28 = sshll.u32 %s470_s27, 4  ;;  %s20_s8 = sshll.u32 %s539_s0, 4  ;;  %s33_s28 = int_to_ptr.vmem [resolvable:$true] %s32_s28  ;;  %s21_s8 = int_to_ptr.hbm [resolvable:$true] %s20_s8 }
   0x3   :  { %s471_s9 = smov 64   ;;  %s472_s10 = smov 4  }
   0x4   :  { %38 = dma.hbm_to_vmem [thread:$0]  %s31_s26, 1280, %s33_s28, [#allocation6], %s471_s9, %s471_s9, %s472_s10  }
   0x5   :  { %s473_s11 = smov [#allocation3]   ;;  %s45_s15 = sshll.u32 %s542_s3, 4  ;;  %s46_s15 = int_to_ptr.hbm [resolvable:$true] %s45_s15 }
   0x6   :  { %s22_s12 = sshll.u32 %s473_s11, 4  ;;  %s474_s1 = smov [#allocation7]   ;;  %s23_s12 = int_to_ptr.vmem [resolvable:$true] %s22_s12 }
   0x7   :  { %25 = dma.hbm_to_vmem [thread:$0]  %s21_s8, 256, %s23_s12, [#allocation4]  }
   0x8   :  { %s47_s16 = sshll.u32 %s474_s1, 4  ;;  %s48_s16 = int_to_ptr.vmem [resolvable:$true] %s47_s16 }
   0x9   :  { %53 = dma.hbm_to_vmem [thread:$0]  %s46_s15, 1024, %s48_s16, [#allocation6], %s471_s9, %s471_s9, %s472_s10  }
   0xa   :  { %466 = dma.done.wait [#allocation4], 256  }
   0xb   :  { %467 = vsyncadd [#allocation4], 4294967040 }
   0xc   :  { %468 = dma.done.wait [#allocation6], 2304  }
   0xd   :  { %469 = vsyncadd [#allocation6], 4294964992  ;;  %v375_v0 = vld [vmem:[#allocation5 + $0x38] sm:$0xff]  ;;  %v377_v1 = vld [vmem:[#allocation5 + $0x48] sm:$0xff]  ;;  %vm161_vm0 = vcmask 261120   ;;  %v285_v40 = vstv %s545_s6  ;;  %vm287_vm1 = vcmask 7168  }
   0xe   :  { %165 = vmatpush.bf16.msra.mxu0 %v375_v0  ;;  %v374_v2 = vld [vmem:[#allocation5 + $0x30] sm:$0xff]  ;;  %184 = vmatpush.bf16.msra.mxu1 %v377_v1  ;;  %v376_v3 = vld [vmem:[#allocation5 + $0x40] sm:$0xff]  ;;  %v74_v4 = vld [vmem:[#allocation3 + $0x8] sm:$0xff] }
   0xf   :  { %v385_v5 = vld [vmem:[#allocation7 + $0x38] sm:$0xff]  ;;  %v76_v7 = vpack.c.bf16 %v74_v4, %v74_v4  ;;  %v384_v8 = vld [vmem:[#allocation7 + $0x30] sm:$0xff]  ;;  %v383_v10 = vld [vmem:[#allocation7 + $0x28] sm:$0xff] }
  0x10   :  { %v373_v6 = vld [vmem:[#allocation5 + $0x28] sm:$0xff]  ;;  %262 = vmatpush.bf16.msra.mxu2 %v385_v5  ;;  %v372_v9 = vld [vmem:[#allocation5 + $0x20] sm:$0xff]  ;;  %v371_v11 = vld [vmem:[#allocation5 + $0x18] sm:$0xff] }
  0x11   :  { %v382_v12 = vld [vmem:[#allocation7 + $0x20] sm:$0xff]  ;;  %v369_v14 = vld [vmem:[#allocation5 + $0x8] sm:$0xff]  ;;  %v368_v15 = vld [vmem:[#allocation5] sm:$0xff] }
  0x12   :  { %166 = vmatpush.bf16.msra.mxu0 %v374_v2  ;;  %185 = vmatpush.bf16.msra.mxu1 %v376_v3  ;;  %v370_v13 = vld [vmem:[#allocation5 + $0x10] sm:$0xff]  ;;  %v381_v18 = vld [vmem:[#allocation7 + $0x18] sm:$0xff]  ;;  %v380_v19 = vld [vmem:[#allocation7 + $0x10] sm:$0xff] }
  0x13   :  { %v73_v16 = vld [vmem:[#allocation3] sm:$0xff]  ;;  %v379_v20 = vld [vmem:[#allocation7 + $0x8] sm:$0xff] }
  0x14   :  { %263 = vmatpush.bf16.msra.mxu2 %v384_v8  ;;  %v75_v17 = vpack.c.bf16 %v73_v16, %v73_v16  ;;  %v378_v21 = vld [vmem:[#allocation7] sm:$0xff] }
  0x15   :  { %335 = vmatmul.msk.bf16.vlgmr.msra.gmra.mxu1 %vm161_vm0, %v76_v7  ;;  %v391_v24 = vld [vmem:[%s541_s2] ss:$0 sm:$0xff] }
  0x16   :  { %167 = vmatpush.bf16.msra.mxu0 %v373_v6  ;;  %v392_v32 = vld [vmem:[%s543_s4] ss:$0 sm:$0xff] }
  0x17   :  { %v393_v36 = vld [vmem:[%s544_s5] ss:$0 sm:$0xff] }
  0x18   :  { %264 = vmatpush.bf16.msra.mxu2 %v383_v10 }
  0x1a   :  { %168 = vmatpush.bf16.msra.mxu0 %v372_v9 }
  0x1c   :  { %265 = vmatpush.bf16.msra.mxu2 %v382_v12 }
  0x1e   :  { %169 = vmatpush.bf16.msra.mxu0 %v371_v11 }
  0x20   :  { %266 = vmatpush.bf16.msra.mxu2 %v381_v18 }
  0x22   :  { %170 = vmatpush.bf16.msra.mxu0 %v370_v13 }
  0x24   :  { %267 = vmatpush.bf16.msra.mxu2 %v380_v19 }
  0x26   :  { %171 = vmatpush.bf16.msra.mxu0 %v369_v14 }
  0x28   :  { %268 = vmatpush.bf16.msra.mxu2 %v379_v20 }
  0x2a   :  { %172 = vmatpush.bf16.msra.mxu0 %v368_v15 }
  0x2c   :  { %269 = vmatpush.bf16.msra.mxu2 %v378_v21 }
  0x2d   :  { %173 = vmatmul.bf16.vlgmr.msra.gmra.mxu0 %v75_v17 }
  0x92   :  { %v187_v22 = vpop.f32.mrf.mxu1 }
  0x9a   :  { %v189_v23 = vpop.f32.mrf.mxu1 }
  0xaa   :  { %v174_v25 = vpop.f32.mrf.mxu0 }
  0xab   :  { %v175_v26 = vadd.f32 %v391_v24, %v174_v25 }
  0xad   :  { %v188_v27 = vadd.f32 %v187_v22, %v175_v26 }
  0xaf   :  { %v191_v28 = vmul.f32 0.2, %v188_v27 }
  0xb1   :  { %v192_v29 = vmax.f32 %v188_v27, %v191_v28 }
  0xb2   :  { %v176_v30 = vpop.f32.mrf.mxu0 }
  0xb3   :  { %v193_v31 = vpack.c.bf16 %v192_v29, %v192_v29 }
  0xb5   :  { %270 = vmatmul.bf16.vlgmr.msra.gmra.mxu2 %v193_v31 }
 0x138   :  { %v271_v33 = vpop.f32.mrf.mxu2 }
 0x139   :  { %v272_v34 = vadd.f32 %v392_v32, %v271_v33 }
 0x13b   :  { %v275_v35 = vmul.f32 0.2, %v272_v34 }
 0x13d   :  { %v276_v37 = vmax.f32 %v272_v34, %v275_v35 }
 0x13f   :  { %v281_v38 = vmul.f32 %v393_v36, %v276_v37 }
 0x140   :  { %v273_v39 = vpop.f32.mrf.mxu2 }
 0x141   :  { %282 = vadd.xlane.f32.xlu0 %v281_v38 }
 0x1b4   :  { %v283_v41 = vpop.xlane.xlu0 %282 }
 0x1b5   :  { %v286_v42 = vadd.f32 %v285_v40, %v283_v41 }
 0x1b7   :  { %288 = vst.msk [vmem:[%s546_s7] sm:$0xff] %vm287_vm1, %v286_v42 }
 0x1b8   :  { %293 = vsyncpa [#allocation4], 1 }
 0x1b9   :  { %294 = vsyncpa [#allocation6], 1 }

</bundles_post_ra>
